<compile_context>
chip_gen: v7x
topology: tpu7x:2x2x1
jax: 0.10.0
libtpu: 0.0.40
codegen_flags: <defaults>
</compile_context>

<pallas_src>
import math
from functools import partial

import jax
import jax.numpy as jnp
import numpy as np
from jax.experimental import pallas as pl
from jax.experimental.pallas import tpu as pltpu


def _round_up(n, m):
    return ((n + m - 1) // m) * m


def feature_resizer_kernel(x_ref, w_ref, p_ref, o_ref, *, do_ln, eps, c2_true):
    # x_ref: (TM, C1p) row tile; w_ref: (C1p, C2p); p_ref: (3, C2p) = [bias; gamma; beta]
    # o_ref: (TM, C2p)
    x = x_ref[...]
    p = p_ref[...]                                   # f32 params regardless of matmul dtype

    # Linear: one MXU matmul over the whole row tile, f32 accumulation; bias add in f32.
    y = jnp.dot(x, w_ref[...], preferred_element_type=jnp.float32) + p[0:1, :]

    if do_ln:
        # LayerNorm over the (true) feature dim: biased variance, eps inside rsqrt,
        # matching torch.nn.LayerNorm(eps=1e-12). Padded columns of y are exactly zero
        # (zero-padded W columns / bias), so sums over the padded width are exact; the
        # centered values are masked so padding does not pollute the variance.
        inv_n = 1.0 / float(c2_true)
        mean = jnp.sum(y, axis=-1, keepdims=True) * inv_n
        centered = y - mean
        if y.shape[-1] != c2_true:                   # static branch: only if C2 was padded
            lane = jax.lax.broadcasted_iota(jnp.int32, y.shape, y.ndim - 1)
            centered = jnp.where(lane < c2_true, centered, 0.0)
        var = jnp.sum(centered * centered, axis=-1, keepdims=True) * inv_n
        inv = jax.lax.rsqrt(var + eps)               # EUP rsqrt, off the VALU path
        y = centered * inv * p[1:2, :] + p[2:3, :]

    o_ref[...] = y.astype(o_ref.dtype)


def _choose_row_tile(c1p, c2p, in_bytes, out_bytes, budget_bytes, max_row_tile):
    """Largest multiple-of-8 row tile whose double-buffered footprint fits the budget."""
    # Fixed cost: W double-buffered + one padded (8, C2p) f32 param tile double-buffered.
    fixed = 2 * c1p * c2p * in_bytes + 2 * 8 * c2p * 4
    # Per-row cost: X / out double-buffered + ~3 f32 LN intermediates (y, centered, squares).
    per_row = 2 * c1p * in_bytes + 2 * c2p * out_bytes + 3 * c2p * 4
    avail = max(budget_bytes - fixed, per_row * 8)
    tm = (avail // per_row) // 8 * 8
    tm = max(8, min(max_row_tile, tm))
    est = fixed + tm * per_row
    return tm, est


def feature_resizer_forward(x, params, *, do_ln=True, eps=1e-12,
                            matmul_dtype=None, row_tile=None,
                            max_row_tile=512,            # sweep up to 1024 on v6e if DMA exposed
                            vmem_budget_bytes=48 * 1024 * 1024):
    """x: (..., C1) -> (..., C2). Fused Linear + (optional) LayerNorm."""
    *lead, c1 = x.shape
    c2 = params["w"].shape[1]
    out_dtype = x.dtype

    x2 = x.reshape(-1, c1)
    m = x2.shape[0]

    # Optional bf16 streaming/matmul path (accumulation + LN stay f32 in the kernel).
    w = params["w"]
    if matmul_dtype is not None:
        x2 = x2.astype(matmul_dtype)
        w = w.astype(matmul_dtype)

    # Pad feature dims to multiples of 128: lane-dense output stores, full MXU tiles.
    c1p = _round_up(c1, 128)
    c2p = _round_up(c2, 128)
    if c1p != c1:
        x2 = jnp.pad(x2, ((0, 0), (0, c1p - c1)))
        w = jnp.pad(w, ((0, c1p - c1), (0, 0)))
    if c2p != c2:
        w = jnp.pad(w, ((0, 0), (0, c2p - c2)))

    # Merge bias / gamma / beta into one replicated (3, C2p) f32 tile.
    p = jnp.stack([params["b"], params["gamma"], params["beta"]], axis=0).astype(jnp.float32)
    if c2p != c2:
        p = jnp.pad(p, ((0, 0), (0, c2p - c2)))

    in_bytes = jnp.dtype(x2.dtype).itemsize
    out_bytes = jnp.dtype(out_dtype).itemsize

    # Row tile from the VMEM budget; pad M up so every tile is full and sublane-dense.
    if row_tile is None:
        tm, est = _choose_row_tile(c1p, c2p, in_bytes, out_bytes,
                                   vmem_budget_bytes, max_row_tile)
    else:
        tm = row_tile
        _, est = _choose_row_tile(c1p, c2p, in_bytes, out_bytes,
                                  vmem_budget_bytes, tm)
    steps = max(1, -(-m // tm))
    if m >= 16 and steps < 2:
        steps = 2                                    # keep both v7x TensorCores busy
    tm = _round_up(-(-m // steps), 8)                # minimize row padding for this step count
    mp = steps * tm
    if mp != m:
        x2 = jnp.pad(x2, ((0, mp - m), (0, 0)))      # padded rows are harmless (LN is per-row)

    vmem_limit = int(min(64 * 1024 * 1024, max(32 * 1024 * 1024, int(est * 1.5))))

    cost = pl.CostEstimate(
        flops=2 * mp * c1p * c2p,
        transcendentals=mp if do_ln else 0,
        bytes_accessed=(mp * c1p * in_bytes + c1p * c2p * in_bytes
                        + 3 * c2p * 4 + mp * c2p * out_bytes),
    )

    kernel = partial(feature_resizer_kernel, do_ln=do_ln, eps=eps, c2_true=c2)

    out = pl.pallas_call(
        kernel,
        out_shape=jax.ShapeDtypeStruct((mp, c2p), out_dtype),
        grid=(steps,),
        in_specs=[
            pl.BlockSpec((tm, c1p), lambda i: (i, 0)),   # X row tile (streamed)
            pl.BlockSpec((c1p, c2p), lambda i: (0, 0)),  # W (replicated, constant index_map)
            pl.BlockSpec((3, c2p), lambda i: (0, 0)),    # [bias; gamma; beta] (replicated)
        ],
        out_specs=pl.BlockSpec((tm, c2p), lambda i: (i, 0)),
        compiler_params=pltpu.CompilerParams(
            dimension_semantics=("parallel",),
            vmem_limit_bytes=vmem_limit),
        cost_estimate=cost,
    )(x2, w, p)

    out = out[:m, :c2]
    return out.reshape(*lead, c2)


def feature_resizer_reference(x, params, *, do_ln=True, eps=1e-12):
    """Pure-JAX reference mirroring the PyTorch FeatureResizer forward."""
    y = x @ params["w"] + params["b"]
    if do_ln:
        mean = jnp.mean(y, axis=-1, keepdims=True)
        var = jnp.mean((y - mean) ** 2, axis=-1, keepdims=True)
        y = (y - mean) / jnp.sqrt(var + eps) * params["gamma"] + params["beta"]
    return y


def init_params(key, c1, c2):
    """Matches nn.Linear default init; LayerNorm gamma=1, beta=0."""
    k_w, k_b = jax.random.split(key)
    s = 1.0 / math.sqrt(c1)
    return {
        "w": jax.random.uniform(k_w, (c1, c2), jnp.float32, -s, s),
        "b": jax.random.uniform(k_b, (c2,), jnp.float32, -s, s),
        "gamma": jnp.ones((c2,), jnp.float32),
        "beta": jnp.zeros((c2,), jnp.float32),
    }


if __name__ == "__main__":
    # Small shapes consistent with the module: B x N embeddings of dim C1 -> C2.
    B, N, C1, C2 = 2, 8, 32, 32

    key = jax.random.PRNGKey(0)
    kx, kp = jax.random.split(key)
    x = jax.random.normal(kx, (B, N, C1), dtype=jnp.float32)
    params = init_params(kp, C1, C2)

    ref = feature_resizer_reference(x, params, do_ln=True)

    # f32 path (exact-precision check against the reference).
    out = jax.block_until_ready(feature_resizer_forward(x, params, do_ln=True))
    np.testing.assert_allclose(np.asarray(out), np.asarray(ref), rtol=2e-5, atol=2e-5)

    # bf16 streaming path: half the HBM bytes on X / native bf16 MXU; f32 accumulation
    # and LN stats inside the kernel, so only input-rounding error remains.
    out_bf16 = jax.block_until_ready(
        feature_resizer_forward(x, params, do_ln=True, matmul_dtype=jnp.bfloat16))
    np.testing.assert_allclose(np.asarray(out_bf16), np.asarray(ref), rtol=3e-2, atol=3e-2)

    # do_ln=False path (Linear only).
    out_noln = jax.block_until_ready(feature_resizer_forward(x, params, do_ln=False))
    ref_noln = feature_resizer_reference(x, params, do_ln=False)
    np.testing.assert_allclose(np.asarray(out_noln), np.asarray(ref_noln), rtol=2e-5, atol=2e-5)

    print("KERNEL_OK")
</pallas_src>

<mosaic_0001>
module attributes {stable_mosaic.version = 11 : i64} {
  func.func @feature_resizer_kernel(%arg0: i32, %arg1: memref<8x128xf32, #tpu.memory_space<vmem>>, %arg2: memref<128x128xf32, #tpu.memory_space<vmem>>, %arg3: memref<3x128xf32, #tpu.memory_space<vmem>>, %arg4: memref<8x128xf32, #tpu.memory_space<vmem>>) attributes {dimension_semantics = [#tpu.dimension_semantics<parallel>], iteration_bounds = array<i64: 2>, scalar_prefetch = 0 : i64, scratch_operands = 0 : i64, tpu.core_type = #tpu.core_type<tc>, window_params = [{transform_indices = @transform_0, window_bounds = array<i64: 8, 128>}, {pipeline_mode = #tpu.pipeline_mode<synchronous>, transform_indices = @transform_1, window_bounds = array<i64: 128, 128>}, {pipeline_mode = #tpu.pipeline_mode<synchronous>, transform_indices = @transform_2, window_bounds = array<i64: 3, 128>}, {transform_indices = @transform_3, window_bounds = array<i64: 8, 128>}]} {
    %c0 = arith.constant 0 : index
    %c0_0 = arith.constant 0 : index
    %0 = vector.load %arg1[%c0, %c0_0] : memref<8x128xf32, #tpu.memory_space<vmem>>, vector<8x128xf32>
    %c0_1 = arith.constant 0 : index
    %c0_2 = arith.constant 0 : index
    %1 = vector.load %arg3[%c0_1, %c0_2] : memref<3x128xf32, #tpu.memory_space<vmem>>, vector<3x128xf32>
    %c0_3 = arith.constant 0 : index
    %c0_4 = arith.constant 0 : index
    %2 = vector.load %arg2[%c0_3, %c0_4] : memref<128x128xf32, #tpu.memory_space<vmem>>, vector<128x128xf32>
    %cst = arith.constant dense<0.000000e+00> : vector<8x128xf32>
    %3 = tpu.matmul %0, %2, %cst {dimension_numbers = #tpu.dot_dimension_numbers<[1], [0], [0], [1], [0, 0, 1, 1], [], []>} : vector<8x128xf32>, vector<128x128xf32>, vector<8x128xf32> -> vector<8x128xf32>
    %4 = vector.extract_strided_slice %1 {offsets = [0, 0], sizes = [1, 128], strides = [1, 1]} : vector<3x128xf32> to vector<1x128xf32>
    %5 = vector.broadcast %4 : vector<1x128xf32> to vector<8x128xf32>
    %6 = arith.addf %3, %5 : vector<8x128xf32>
    %cst_5 = arith.constant dense<0.000000e+00> : vector<8xf32>
    %7 = vector.multi_reduction <add>, %6, %cst_5 [1] : vector<8x128xf32> to vector<8xf32>
    %8 = vector.shape_cast %7 : vector<8xf32> to vector<8x1xf32>
    %cst_6 = arith.constant 3.125000e-02 : f32
    %9 = vector.broadcast %cst_6 : f32 to vector<8x1xf32>
    %10 = arith.mulf %8, %9 : vector<8x1xf32>
    %11 = vector.broadcast %10 : vector<8x1xf32> to vector<8x128xf32>
    %12 = arith.subf %6, %11 : vector<8x128xf32>
    %13 = tpu.iota {dimensions = array<i32: 1>} : vector<8x128xi32>
    %c32_i32 = arith.constant 32 : i32
    %14 = vector.broadcast %c32_i32 : i32 to vector<8x128xi32>
    %15 = arith.cmpi slt, %13, %14 : vector<8x128xi32>
    %cst_7 = arith.constant 0.000000e+00 : f32
    %16 = vector.broadcast %cst_7 : f32 to vector<8x128xf32>
    %17 = arith.select %15, %12, %16 : vector<8x128xi1>, vector<8x128xf32>
    %18 = arith.mulf %17, %17 : vector<8x128xf32>
    %cst_8 = arith.constant dense<0.000000e+00> : vector<8xf32>
    %19 = vector.multi_reduction <add>, %18, %cst_8 [1] : vector<8x128xf32> to vector<8xf32>
    %20 = vector.shape_cast %19 : vector<8xf32> to vector<8x1xf32>
    %cst_9 = arith.constant 3.125000e-02 : f32
    %21 = vector.broadcast %cst_9 : f32 to vector<8x1xf32>
    %22 = arith.mulf %20, %21 : vector<8x1xf32>
    %cst_10 = arith.constant 9.99999996E-13 : f32
    %23 = vector.broadcast %cst_10 : f32 to vector<8x1xf32>
    %24 = arith.addf %22, %23 : vector<8x1xf32>
    %25 = math.rsqrt %24 : vector<8x1xf32>
    %26 = vector.broadcast %25 : vector<8x1xf32> to vector<8x128xf32>
    %27 = arith.mulf %17, %26 : vector<8x128xf32>
    %28 = vector.extract_strided_slice %1 {offsets = [1, 0], sizes = [1, 128], strides = [1, 1]} : vector<3x128xf32> to vector<1x128xf32>
    %29 = vector.broadcast %28 : vector<1x128xf32> to vector<8x128xf32>
    %30 = arith.mulf %27, %29 : vector<8x128xf32>
    %31 = vector.extract_strided_slice %1 {offsets = [2, 0], sizes = [1, 128], strides = [1, 1]} : vector<3x128xf32> to vector<1x128xf32>
    %32 = vector.broadcast %31 : vector<1x128xf32> to vector<8x128xf32>
    %33 = arith.addf %30, %32 : vector<8x128xf32>
    %c0_11 = arith.constant 0 : index
    %c0_12 = arith.constant 0 : index
    %34 = vector.load %arg4[%c0_11, %c0_12] : memref<8x128xf32, #tpu.memory_space<vmem>>, vector<8x128xf32>
    tpu.vector_store %arg4[%c0_11, %c0_12], %33 {strides = array<i32>} : memref<8x128xf32, #tpu.memory_space<vmem>>, vector<8x128xf32>,
    return
  }
  func.func @transform_0(%arg0: i32) -> (i32, i32) {
    %c0_i32 = arith.constant 0 : i32
    %c0_i32_0 = arith.constant 0 : i32
    return %arg0, %c0_i32 : i32, i32
  }
  func.func @transform_1(%arg0: i32) -> (i32, i32) {
    %c0_i32 = arith.constant 0 : i32
    %c0_i32_0 = arith.constant 0 : i32
    %c0_i32_1 = arith.constant 0 : i32
    return %c0_i32, %c0_i32_0 : i32, i32
  }
  func.func @transform_2(%arg0: i32) -> (i32, i32) {
    %c0_i32 = arith.constant 0 : i32
    %c0_i32_0 = arith.constant 0 : i32
    %c0_i32_1 = arith.constant 0 : i32
    return %c0_i32, %c0_i32_0 : i32, i32
  }
  func.func @transform_3(%arg0: i32) -> (i32, i32) {
    %c0_i32 = arith.constant 0 : i32
    %c0_i32_0 = arith.constant 0 : i32
    return %arg0, %c0_i32 : i32, i32
  }
}

</mosaic_0001>

<bundles_post_ra>
// kernel: tpu_custom_call.1
= control target key start
LH: loop header
LB: loop body
LE: loop exit
PB: predicated region body
PF: predicated region fallthrough
CT: control target
= control target key end

     0   :  { %8 = vsyncpa [#allocation3], 0  ;;  %s931_s0 = inlined_call_operand.hbm [shape: f32[16,128], index: 0, kind: input, shape index: {}]   ;;  %s932_s1 = inlined_call_operand.hbm [shape: f32[128,128], index: 1, kind: input, shape index: {}]   ;;  %s933_s2 = inlined_call_operand.vmem [shape: f32[3,128], index: 2, kind: input, shape index: {}]   ;;  %s934_s3 = inlined_call_operand.hbm [shape: f32[16,128], index: 3, kind: output, shape index: {}]  }
   0x1   :  { %10 = vsyncpa [#allocation3 + $0x1], 0 }
   0x2   :  { %11 = vsyncpa [#allocation6], 0 }
   0x3   :  { %12 = vsyncpa [#allocation4], 0 }
   0x4   :  { %14 = vsyncpa [#allocation4 + $0x1], 0  ;;  %s725_s12 = smov 0   ;;  %s727_s13 = smov 0  }
   0x5   :  { %s729_s14 = smov 0   ;;  %s731_s15 = smov 0  }
   0x6 LB: > { %s746_s16 = sadd.s32 4294967295, %s695_s15   ;;  %s413_s17 = sadd.s32 4294967294, %s695_s15   ;;  %s695_s15 = sphi %s731_s15, %s954_s15   ;;  %s691_s14 = sphi %s729_s14, %s953_s14   ;;  %s687_s13 = sphi %s727_s13, %s952_s13   ;;  %s683_s12 = sphi %s725_s12, %s951_s12  }
   0x7   : > { %p40_p0 = scmp.ne.s32.totalorder %s687_s13, %s683_s12  ;;  %p935_p1 = scmp.eq.s32.totalorder %s746_s16, 0 }
   0x8   : > { %p112_p3 = scmp.eq.s32.totalorder %s413_s17, 1  ;;  %p414_p5 = scmp.ge.s32.totalorder %s695_s15, 1 }
   0x9   : > { %p755_p4 = por %p935_p1, %p40_p0  ;;  %p119_p7 = scmp.lt.s32.totalorder %s695_s15, 3 }
   0xa   : > { %p760_p6 = por %p112_p3, %p40_p0  ;;  %s697_s21 = smov [#allocation5]  }
   0xb   : > { %s938_s18 = scalar_select %p755_p4, 1, 0 }
   0xc   : > { %s939_s19 = scalar_select %p760_p6, 1, 0 }
   0xd   : > { %p765_p8 = pnand %p414_p5, %p119_p7  ;;  %s131_s22 = sshll.u32 %s697_s21, 4  ;;  %s769_s22 = int_to_ptr.vmem [resolvable:$true] %s131_s22 }
   0xe   : > { %s781_s24 = sadd.s32 1, %s695_s15   ;;  %s27_s25 = sadd.s32 1, %s691_s14 }
   0xf   : > { %s940_s20 = scalar_select %p765_p8, 1, 0 }
  0x10   : > { %p511_p9 = pneg %p765_p8  ;;  %s24_s26 = ssub.s32 %s695_s15, %s781_s24 }
  0x11   : > { %s567_s29 = scalar_lea.hbm %s932_s1, 2048 }
  0x12   : > { %p776_p11 = pnand %p511_p9, %p935_p1  ;;  %p568_p12 = scmp.ne.s32.totalorder %s932_s1, %s567_s29 }
  0x13   : > { %p574_p5 = scmp.lt.u32.totalorder %s567_s29, %s932_s1 }
  0x14   : > { %p569_p13 = pneg %p776_p11 }
  0x16   : > { %p570_p0 = pnand %p569_p13, %p568_p12 }
  0x18   : > { %p571_p3 = pneg %p570_p0 }
  0x1a   : > { %p576_p7 = pnand %p574_p5, %p571_p3 }
  0x1c   : > { %579 = shalt.err (!%p576_p7)
}
  0x1d   : > { %s580_s7 = scalar_lea.vmem %s769_s22, 2048  ;;  %p588_p2 = scmp.lt.s32.totalorder %s769_s22, %s769_s22 }
  0x1e   : > { %p581_p9 = scmp.ne.s32.totalorder %s769_s22, %s580_s7  ;;  %p589_p6 = scmp.lt.s32.totalorder %s580_s7, %s580_s7 }
  0x20   : > { %p583_p10 = pnand %p581_p9, %p569_p13  ;;  %p590_p4 = por %p589_p6, %p588_p2 }
  0x22   : > { %p584_p1 = pneg %p583_p10 }
  0x24   : > { %p591_p8 = pnand %p590_p4, %p584_p1 }
  0x26   : > { %594 = shalt.err (!%p591_p8)
}
  0x27   : > { %s698_s8 = smov 128   ;;  %s699_s9 = smov 8  }
  0x28   : > { %514 = dma.hbm_to_vmem [thread:$0]  (!%p776_p11), %s932_s1, 2048, %s769_s22, [#allocation6], %s698_s8, %s698_s8, %s699_s9  }
  0x29   : > { %p25_p2 = scmp.eq.s32.totalorder %s24_s26, 0  ;;  %p34_p1 = scmp.ne.s32.totalorder %s691_s14, %s687_s13 }
  0x2a   : > { %p35_p4 = scmp.eq.s32.totalorder %s695_s15, 0  ;;  %p524_p6 = scmp.lt.s32.totalorder %s695_s15, 2 }
  0x2b   : > { %s812_s17 = scalar_select %p25_p2, %s691_s14, %s27_s25  }
  0x2c   : > { %p36_p8 = por %p35_p4, %p34_p1  ;;  %p942_p10 = scmp.eq.s32.totalorder %s746_s16, 1 }
  0x2d   : > { %s148_s27 = sand.u32 1, %s691_s14   ;;  %s418_s28 = sshll.u32 %s695_s15, 7 }
  0x2e   : > { %p816_p12 = por %p942_p10, %p34_p1  ;;  %s417_s29 = sshll.u32 %s148_s27, 3 }
  0x2f   : > { %s825_s4 = scalar_lea.hbm %s931_s0, %s418_s28  ;;  %s152_s22 = scalar_lea.vmem [#allocation2], %s417_s29 }
  0x30   : > { %s159_s25 = sshll.u32 %s152_s22, 4  ;;  %p827_p11 = pnand %p524_p6, %p36_p8  ;;  %s831_s25 = int_to_ptr.vmem [resolvable:$true] %s159_s25 }
  0x31   : > { %s149_s5 = scalar_lea.sflag [#allocation3], %s148_s27  ;;  %s595_s6 = scalar_lea.hbm %s825_s4, 128 }
  0x32   : > { %p596_p13 = scmp.ne.s32.totalorder %s825_s4, %s595_s6  ;;  %p597_p0 = pneg %p827_p11 }
  0x33   : > { %s600_s9 = scalar_lea.hbm %s931_s0, 256  ;;  %p601_p7 = scmp.lt.u32.totalorder %s825_s4, %s931_s0 }
  0x34   : > { %p598_p3 = pnand %p597_p0, %p596_p13  ;;  %p602_p9 = scmp.lt.u32.totalorder %s600_s9, %s595_s6 }
  0x35   : > { %p604_p1 = scmp.lt.u32.totalorder %s595_s6, %s825_s4 }
  0x36   : > { %p599_p5 = pneg %p598_p3  ;;  %p603_p2 = por %p602_p9, %p601_p7 }
  0x38   : > { %p605_p4 = por %p604_p1, %p603_p2 }
  0x3a   : > { %p606_p6 = pnand %p605_p4, %p599_p5 }
  0x3c   : > { %609 = shalt.err (!%p606_p6)
}
  0x3d   : > { %s610_s27 = scalar_lea.vmem %s831_s25, 128  ;;  %s700_s28 = smov [#allocation2]  }
  0x3e   : > { %p611_p8 = scmp.ne.s32.totalorder %s831_s25, %s610_s27  ;;  %s615_s29 = sshll.u32 %s700_s28, 4  ;;  %s616_s29 = int_to_ptr.vmem [resolvable:$false] %s615_s29 }
  0x3f   : > { %s617_s23 = scalar_lea.vmem %s616_s29, 256  ;;  %p618_p3 = scmp.lt.s32.totalorder %s831_s25, %s616_s29 }
  0x40   : > { %p613_p10 = pnand %p611_p8, %p597_p0  ;;  %p619_p7 = scmp.lt.s32.totalorder %s617_s23, %s610_s27 }
  0x42   : > { %p614_p13 = pneg %p613_p10  ;;  %p620_p9 = por %p619_p7, %p618_p3 }
  0x44   : > { %p621_p2 = pnand %p620_p9, %p614_p13 }
  0x46   : > { %624 = shalt.err (!%p621_p2)
}
  0x47   : > { %518 = dma.hbm_to_vmem [thread:$0]  (!%p827_p11), %s825_s4, 128, %s831_s25, %s149_s5  }
  0x48   : > { %p945_p5 = scmp.ne.s32.totalorder %s940_s20, 0 }
  0x49   : > { %s861_s30 = sand.u32 (!%p945_p5), 1, %s687_s13   ;;  %p946_p0 = scmp.ne.s32.totalorder (!%p945_p5), %s938_s18, 0 }
  0x4a   : > { %168 = sbr.rel (%p945_p5) target bundleno = 659 (0x293), region = 32  ;;  %s420_s22 = sshll.u32 (!%p945_p5), %s861_s30, 3 }
  0x4b   : > { %s171_s6 = scalar_lea.sflag (!%p945_p5), [#allocation3], %s861_s30  ;;  %s867_s7 = scalar_lea.vmem (!%p945_p5), [#allocation2], %s420_s22 }
  0x51   : > { %670 = dma.done.wait (%p946_p0), %s171_s6, 128  }
  0x52   : > { %672 = vsyncadd (%p946_p0), %s171_s6, 4294967168  ;;  %p947_p11 = scmp.eq.s32.totalorder %s746_s16, 0 }
  0x54   : > { %674 = dma.done.wait (%p947_p11), [#allocation6], 2048   ;;  %p948_p1 = pmov %p947_p11 }
  0x55   : > { %v701_v0 = vmov 0.0|0.0   ;;  %vm702_vm0 = vmmov 0   ;;  %v703_v1 = vmov 0.0   ;;  %v203_v2 = vld [vmem:[#allocation5] sm:$0xff]  ;;  %v204_v3 = vld [vmem:[#allocation5 + $0x8] sm:$0xff]  ;;  %v205_v4 = vld [vmem:[#allocation5 + $0x10] sm:$0xff]  ;;  %v219_v27 = vlaneseq }
  0x56   : > { %676 = vsyncadd (%p948_p1), [#allocation6], 4294965248  ;;  %479 = vmatprep.subr.bf16.mxu0 %v701_v0  ;;  %476 = vmatprep.mubr.msk.f32.mxu0 %vm702_vm0, %v703_v1  ;;  %v480_v5 = vpack.c.bf16 %v204_v3, %v203_v2  ;;  %v206_v6 = vld [vmem:[#allocation5 + $0x18] sm:$0xff]  ;;  %v207_v8 = vld [vmem:[#allocation5 + $0x20] sm:$0xff]  ;;  %s424_s4 = sshll.u32 %s746_s16, 7  ;;  %s200_s25 = scalar_lea.vmem [#allocation7], %s420_s22 }
  0x57   : > { %v483_v7 = vpack.c.bf16 %v206_v6, %v205_v4  ;;  %v208_v9 = vld [vmem:[#allocation5 + $0x28] sm:$0xff]  ;;  %v209_v11 = vld [vmem:[#allocation5 + $0x30] sm:$0xff]  ;;  %v210_v12 = vld [vmem:[#allocation5 + $0x38] sm:$0xff]  ;;  %v220_v28 = vshrl.u32 %v219_v27, 7  ;;  %v298_v35 = vand.u32 127, %v219_v27  ;;  %s333_s26 = sshll.u32 %s200_s25, 4  ;;  %s887_s9 = scalar_lea.hbm %s934_s3, %s424_s4  ;;  %s889_s26 = int_to_ptr.vmem [resolvable:$true] %s333_s26 }
  0x58   : > { %481 = vmatpush3.bf16.msra.mxu0 %v480_v5  ;;  %v486_v10 = vpack.c.bf16 %v208_v9, %v207_v8  ;;  %v489_v13 = vpack.c.bf16 %v210_v12, %v209_v11  ;;  %v211_v14 = vld [vmem:[#allocation5 + $0x40] sm:$0xff]  ;;  %v212_v15 = vld [vmem:[#allocation5 + $0x48] sm:$0xff]  ;;  %v213_v17 = vld [vmem:[#allocation5 + $0x50] sm:$0xff]  ;;  %s320_s10 = scalar_lea.sflag [#allocation4], %s861_s30  ;;  %s625_s11 = scalar_lea.vmem %s889_s26, 128 }
  0x59   : > { %482 = vmatprep.subr.bf16.mxu0 %v701_v0  ;;  %v492_v16 = vpack.c.bf16 %v212_v15, %v211_v14  ;;  %v214_v18 = vld [vmem:[#allocation5 + $0x58] sm:$0xff]  ;;  %v215_v20 = vld [vmem:[#allocation5 + $0x60] sm:$0xff]  ;;  %v216_v21 = vld [vmem:[#allocation5 + $0x68] sm:$0xff]  ;;  %v221_v29 = vsub.s32 0, %v220_v28  ;;  %vm299_vm1 = vcmp.lt.s32.totalorder %v298_v35, 32  ;;  %v310_v44 = vsub.s32 1, %v220_v28  ;;  %p626_p4 = scmp.ne.s32.totalorder %s889_s26, %s625_s11 }
  0x5a   : > { %v495_v19 = vpack.c.bf16 %v214_v18, %v213_v17  ;;  %v498_v22 = vpack.c.bf16 %v216_v21, %v215_v20  ;;  %v217_v23 = vld [vmem:[#allocation5 + $0x70] sm:$0xff]  ;;  %v218_v24 = vld [vmem:[#allocation5 + $0x78] sm:$0xff]  ;;  %v315_v45 = vsub.s32 2, %v220_v28  ;;  %s704_s16 = smov [#allocation7]  }
  0x5b   : > { %v501_v25 = vpack.c.bf16 %v218_v24, %v217_v23  ;;  %v201_v26 = vld [vmem:[%s867_s7] sm:$0xff]  ;;  %p627_p6 = pnand %p626_p4, %p816_p12  ;;  %s629_s27 = sshll.u32 %s704_s16, 4  ;;  %s630_s27 = int_to_ptr.vmem [resolvable:$false] %s629_s27 }
  0x5c   : > { %484 = vmatpush3.bf16.msra.mxu0 %v483_v7  ;;  %v202_v30 = vld [vmem:[%s933_s2] sm:$0x7]  ;;  %s631_s28 = scalar_lea.vmem %s630_s27, 256  ;;  %p632_p10 = scmp.lt.s32.totalorder %s889_s26, %s630_s27 }
  0x5d   : > { %485 = vmatprep.subr.bf16.mxu0 %v701_v0  ;;  %v222_v31 = vrot.slane %v202_v30, %v221_v29  ;;  %v311_v46 = vrot.slane %v202_v30, %v310_v44  ;;  %v316_v48 = vrot.slane %v202_v30, %v315_v45  ;;  %p628_p8 = pneg %p627_p6  ;;  %p633_p13 = scmp.lt.s32.totalorder %s631_s28, %s625_s11 }
  0x5f   : > { %p634_p3 = por %p633_p13, %p632_p10 }
  0x60   : > { %487 = vmatpush3.bf16.msra.mxu0 %v486_v10 }
  0x61   : > { %488 = vmatprep.subr.bf16.mxu0 %v701_v0  ;;  %p635_p7 = pnand %p634_p3, %p628_p8 }
  0x64   : > { %490 = vmatpush3.bf16.msra.mxu0 %v489_v13 }
  0x65   : > { %491 = vmatprep.subr.bf16.mxu0 %v701_v0 }
  0x68   : > { %493 = vmatpush3.bf16.msra.mxu0 %v492_v16 }
  0x69   : > { %494 = vmatprep.subr.bf16.mxu0 %v701_v0 }
  0x6c   : > { %496 = vmatpush3.bf16.msra.mxu0 %v495_v19 }
  0x6d   : > { %497 = vmatprep.subr.bf16.mxu0 %v701_v0 }
  0x70   : > { %499 = vmatpush3.bf16.msra.mxu0 %v498_v22 }
  0x71   : > { %500 = vmatprep.subr.bf16.mxu0 %v701_v0 }
  0x74   : > { %502 = vmatpush3.bf16.msra.mxu0 %v501_v25 }
  0x77   : > { %477 = vmatmul.mubr.f32.vlgmr.msra.gmra.mrb[0].mxu0 %v201_v26 }
 0x14a   : > { %v289_v32 = vpop.f32.mrb[0].mxu0 }
 0x14b   : > { %v290_v33 = vadd.f32 %v289_v32, %v222_v31  ;;  %v478_v34 = vpop.f32.mrb[1].mxu0 }
 0x14d   : > { %293 = vadd.xlane.f32.xlu0 %v290_v33 }
 0x1da   : > { %v294_v36 = vpop.xlane.xlu0 %293 }
 0x1db   : > { %v295_v37 = vmul.f32 0.03125, %v294_v36 }
 0x1dd   : > { %v296_v38 = vsub.f32 %v290_v33, %v295_v37 }
 0x1df   : > { %v300_v39 = vsel %vm299_vm1, %v296_v38, 0.0 }
 0x1e0   : > { %v301_v40 = vmul.f32 %v300_v39, %v300_v39 }
 0x1e2   : > { %302 = vadd.xlane.f32.xlu0 %v301_v40 }
 0x26f   : > { %v303_v41 = vpop.xlane.xlu0 %302 }
 0x270   : > { %v304_v42 = vmul.f32 0.03125, %v303_v41 }
 0x272   : > { %v305_v43 = vadd.f32 1e-12, %v304_v42 }
 0x274   : > { %565 = vrsqrt.f32 %v305_v43 }
 0x27e   : > { %v566_v47 = vpop.eup %565 }
 0x27f   : > { %v307_v49 = vmul.f32 %v566_v47, %v300_v39 }
 0x281   : > { %v312_v50 = vmul.f32 %v311_v46, %v307_v49 }
 0x283   : > { %v317_v51 = vadd.f32 %v316_v48, %v312_v50 }
 0x285   : > { %318 = vst [vmem:[%s200_s25] sm:$0xff] %v317_v51 }
 0x286   : > { %638 = shalt.err (!%p635_p7)
}
 0x287   : > { %s639_s29 = scalar_lea.hbm %s887_s9, 128  ;;  %s643_s22 = scalar_lea.hbm %s934_s3, 256 }
 0x288   : > { %p640_p9 = scmp.ne.s32.totalorder %s887_s9, %s639_s29  ;;  %p644_p0 = scmp.lt.u32.totalorder %s887_s9, %s934_s3 }
 0x289   : > { %p645_p11 = scmp.lt.u32.totalorder %s643_s22, %s639_s29  ;;  %p647_p4 = scmp.lt.u32.totalorder %s639_s29, %s887_s9 }
 0x28a   : > { %p641_p2 = pnand %p640_p9, %p816_p12 }
 0x28b   : > { %p646_p1 = por %p645_p11, %p644_p0 }
 0x28c   : > { %p642_p5 = pneg %p641_p2 }
 0x28d   : > { %p648_p6 = por %p647_p4, %p646_p1 }
 0x28f   : > { %p649_p8 = pnand %p648_p6, %p642_p5 }
 0x291   : > { %652 = shalt.err (!%p649_p8)
}
 0x292   : > { %509 = dma.vmem_to_hbm [thread:$0]  (%p816_p12), %s889_s26, 128, %s887_s9, %s320_s10  }
 0x293 PF: > { %s345_s18 = sand.u32 1, %s683_s12   ;;  %p949_p10 = scmp.ne.s32.totalorder %s939_s19, 0 }
 0x294   : > { %p950_p13 = scmp.ge.s32.totalorder %s695_s15, 2  ;;  %s346_s20 = scalar_lea.sflag [#allocation4], %s345_s18 }
 0x296   : > { %p520_p3 = pnand %p950_p13, %p949_p10 }
 0x298   : > { %678 = dma.done.wait (!%p520_p3), %s346_s20, 128  }
 0x299   : > { %680 = vsyncadd (!%p520_p3), %s346_s20, 4294967168  ;;  %p17_p7 = scmp.ge.s32.totalorder %s781_s24, 4   ;;  %s951_s12 = smov %s687_s13 }
 0x29a   : > { %s952_s13 = smov %s691_s14  ;;  %s953_s14 = smov %s812_s17 }
 0x29b   : > { %s954_s15 = smov %s781_s24  ;;  %19 = sbr.rel (!%p17_p7) target bundleno = 6 (0x6), region = 81 }
 0x2a2   :  { %351 = vsyncpa [#allocation3], 1 }
 0x2a3   :  { %353 = vsyncpa [#allocation3 + $0x1], 1 }
 0x2a4   :  { %354 = vsyncpa [#allocation6], 1 }
 0x2a5   :  { %355 = vsyncpa [#allocation4], 1 }
 0x2a6   :  { %357 = vsyncpa [#allocation4 + $0x1], 1 }

</bundles_post_ra>
